<compile_context>
chip_gen: v7x
topology: tpu7x:2x2x1
jax: 0.10.0
libtpu: 0.0.40
codegen_flags: <defaults>
</compile_context>

<pallas_src>
import jax
import jax.numpy as jnp
from jax.experimental import pallas as pl
from jax.experimental.pallas import tpu as pltpu

N_IN = 2             # n_in_node (forward slices features to :2)
N_HID = 32           # n_hid
PRED_STEPS = 19      # fixed loop length in forward()

LANE_TILE = 4096                     # max rows per grid step (multiple of 256)
VMEM_LIMIT_BYTES = 32 * 1024 * 1024  # explicit scoped-VMEM cap (safe on v7x 64 MiB)


def _round_up(x, m):
    return ((x + m - 1) // m) * m


# --- row layout of the single packed constant block (sublane offsets) --------
_WX = 0                                   # rows   0: 96  -> [w_enc|w_ii|w_in].T, cols 0:2
_WO1 = 3 * N_HID                          # rows  96:128 -> w_o1.T
_WO2 = 4 * N_HID                          # rows 128:160 -> w_o2.T
_WO3 = 5 * N_HID                          # rows 160:162 -> w_o3.T
_BX = _round_up(_WO3 + N_IN, 8)           # rows 168:264 -> [b_enc;b_ii;b_in] column
_BO1 = _BX + 3 * N_HID                    # rows 264:296 -> b_o1 column
_BO2 = _BO1 + N_HID                       # rows 296:328 -> b_o2 column
_BO3 = _BO2 + N_HID                       # rows 328:330 -> b_o3 column
_CST_ROWS = _round_up(_BO3 + N_IN, 8)     # 336 rows total


def rnn_decoder_kernel(x_ref, c_ref, pred_ref):
    """One lane-tile of the decoder.  x_ref: (N_IN, TR) with rows on lanes."""
    x = x_ref[...]                                                    # (2, TR) f32

    # Fused x-side projection (encoder stand-in | input_i | input_n).
    # The dead input_r block is NOT computed (its gate only multiplied
    # agg_msgs, which is identically zero in the reference forward).
    wx = c_ref[_WX:_WX + 3 * N_HID, 0:N_IN]                           # (96, 2)
    proj = jnp.dot(wx, x, preferred_element_type=jnp.float32)         # (96, TR)
    proj = proj + c_ref[_BX:_BX + 3 * N_HID, 0:1]                     # lane-broadcast bias

    h_enc = jnp.tanh(proj[0 * N_HID:1 * N_HID, :])                    # hidden = encoderr(ins)
    i_gate = jax.nn.sigmoid(proj[1 * N_HID:2 * N_HID, :])
    n_gate = jnp.tanh(proj[2 * N_HID:3 * N_HID, :])
    hidden = (1.0 - i_gate) * n_gate + i_gate * h_enc                 # (32, TR)

    # Output MLP (dropout_prob == 0.0 -> identity dropout).
    p = jax.nn.relu(
        jnp.dot(c_ref[_WO1:_WO1 + N_HID, :], hidden,
                preferred_element_type=jnp.float32)
        + c_ref[_BO1:_BO1 + N_HID, 0:1])
    p = jax.nn.relu(
        jnp.dot(c_ref[_WO2:_WO2 + N_HID, :], p,
                preferred_element_type=jnp.float32)
        + c_ref[_BO2:_BO2 + N_HID, 0:1])
    p = (jnp.dot(c_ref[_WO3:_WO3 + N_IN, :], p,
                 preferred_element_type=jnp.float32)
         + c_ref[_BO3:_BO3 + N_IN, 0:1])                              # (2, TR)

    pred_ref[...] = x + p                                             # residual


def init_params(key):
    """Deterministic parameter init. Linear weights stored as [in, out]; biases [1, out]."""
    ks = jax.random.split(key, 10)

    def lin(k, fan_in, fan_out):
        scale = 1.0 / jnp.sqrt(jnp.float32(fan_in))
        kw, kb = jax.random.split(k)
        w = jax.random.uniform(kw, (fan_in, fan_out), jnp.float32, -scale, scale)
        b = jax.random.uniform(kb, (1, fan_out), jnp.float32, -scale, scale)
        return w, b

    p = {}
    p["w_enc"], p["b_enc"] = lin(ks[0], N_IN, N_HID)      # encoder stand-in
    p["w_ir"], p["b_ir"] = lin(ks[1], N_IN, N_HID)        # input_r (dead gate)
    p["w_ii"], p["b_ii"] = lin(ks[2], N_IN, N_HID)        # input_i
    p["w_in"], p["b_in"] = lin(ks[3], N_IN, N_HID)        # input_n
    # hidden_r / hidden_i / hidden_h only ever multiply agg_msgs == 0; kept for
    # the pure-JAX reference, never passed to the kernel.
    p["w_hr"], _ = lin(ks[4], N_HID, N_HID)
    p["w_hi"], _ = lin(ks[5], N_HID, N_HID)
    p["w_hh"], _ = lin(ks[6], N_HID, N_HID)
    p["w_o1"], p["b_o1"] = lin(ks[7], N_HID, N_HID)       # out_fc1
    p["w_o2"], p["b_o2"] = lin(ks[8], N_HID, N_HID)       # out_fc2
    p["w_o3"], p["b_o3"] = lin(ks[9], N_HID, N_IN)        # out_fc3
    return p


def _pack_constants(params):
    """Pack every weight/bias into one (336, 32) block; all kernel slices are
    sublane-aligned row ranges at lane offset 0 (weights) / a single lane
    column (biases), so a single tiny DMA carries all constants."""
    cst = jnp.zeros((_CST_ROWS, N_HID), jnp.float32)
    wx = jnp.concatenate([params["w_enc"], params["w_ii"], params["w_in"]],
                         axis=1).T                                    # (96, 2)
    cst = cst.at[_WX:_WX + 3 * N_HID, 0:N_IN].set(wx)
    cst = cst.at[_WO1:_WO1 + N_HID, :].set(params["w_o1"].T)
    cst = cst.at[_WO2:_WO2 + N_HID, :].set(params["w_o2"].T)
    cst = cst.at[_WO3:_WO3 + N_IN, :].set(params["w_o3"].T)
    bx = jnp.concatenate([params["b_enc"], params["b_ii"], params["b_in"]],
                         axis=1).T                                    # (96, 1)
    cst = cst.at[_BX:_BX + 3 * N_HID, 0:1].set(bx)
    cst = cst.at[_BO1:_BO1 + N_HID, 0:1].set(params["b_o1"].T)
    cst = cst.at[_BO2:_BO2 + N_HID, 0:1].set(params["b_o2"].T)
    cst = cst.at[_BO3:_BO3 + N_IN, 0:1].set(params["b_o3"].T)
    return cst


def _choose_row_tile(r_pad128):
    """Pick the lane-tile width (static Python int).

    * never exceed LANE_TILE (VMEM-aware cap, fine on v7x's 64 MiB part);
    * whenever there is more than one 128-lane tile of rows, force >= 2 grid
      steps so v7x gets both TensorCores and v5e/v6e get DMA/compute overlap.
    """
    if r_pad128 <= 128:
        return 128                           # cannot split a single lane tile
    if r_pad128 <= 2 * LANE_TILE:
        half = r_pad128 // 2
        return max(128, (half // 128) * 128)  # exactly-2 (or 3) tiles
    return LANE_TILE


@jax.jit
def rnn_decoder_forward(params, inputs):
    """inputs: [B, N, T, D] (as passed to the PyTorch forward). Returns [B, N, 19, 2]."""
    B, N, T, D = inputs.shape
    assert T >= PRED_STEPS, "forward() reads 19 time steps; got T=%d" % T

    # forward() transposes N<->T and then indexes the step axis, so the
    # per-step input is inputs[:, :, step, :2].  Slice FIRST (halves the
    # volume of any layout op) and flatten directly in (B, N, step) order so
    # no N<->T transpose is needed on input or output.
    x = inputs[:, :, :PRED_STEPS, :N_IN]                         # [B, N, 19, 2]
    R = B * N * PRED_STEPS
    flat_t = x.reshape(R, N_IN).astype(jnp.float32).T            # (2, R) rows -> lanes

    R_pad128 = _round_up(R, 128)
    row_tile = _choose_row_tile(R_pad128)
    R_pad = _round_up(R_pad128, row_tile)
    flat_t = jnp.pad(flat_t, ((0, 0), (0, R_pad - R)))

    cst = _pack_constants(params)

    grid = (R_pad // row_tile,)
    data_spec = pl.BlockSpec((N_IN, row_tile), lambda i: (0, i))

    out = pl.pallas_call(
        rnn_decoder_kernel,
        out_shape=jax.ShapeDtypeStruct((N_IN, R_pad), jnp.float32),
        grid=grid,
        in_specs=[data_spec,
                  pl.BlockSpec((_CST_ROWS, N_HID), lambda i: (0, 0))],
        out_specs=data_spec,
        compiler_params=pltpu.CompilerParams(
            dimension_semantics=("parallel",),
            vmem_limit_bytes=VMEM_LIMIT_BYTES),
    )(flat_t, cst)

    # Rows were flattened in (B, N, step) order -> already the module's
    # stacked-then-transposed [B, N, 19, 2] layout.
    return out[:, :R].T.reshape(B, N, PRED_STEPS, N_IN)


def _reference_jax(params, inputs):
    """Pure-JAX transcription of the module math (including the agg-msg terms
    that are identically zero) used as the correctness oracle."""
    x = jnp.transpose(inputs, (0, 2, 1, 3))[..., :N_IN][:, :PRED_STEPS]  # [B,19,N,2]
    hidden = jnp.tanh(x @ params["w_enc"] + params["b_enc"])             # encoder stand-in
    agg = jnp.zeros(x.shape[:-1] + (N_HID,), jnp.float32)                # all_msgs never written
    r = jax.nn.sigmoid(x @ params["w_ir"] + params["b_ir"] + agg @ params["w_hr"])
    i = jax.nn.sigmoid(x @ params["w_ii"] + params["b_ii"] + agg @ params["w_hi"])
    n = jnp.tanh(x @ params["w_in"] + params["b_in"] + r * (agg @ params["w_hh"]))
    hidden = (1.0 - i) * n + i * hidden
    p = jax.nn.relu(hidden @ params["w_o1"] + params["b_o1"])
    p = jax.nn.relu(p @ params["w_o2"] + params["b_o2"])
    p = p @ params["w_o3"] + params["b_o3"]
    return jnp.transpose(x + p, (0, 2, 1, 3))


if __name__ == "__main__":
    key = jax.random.PRNGKey(0)
    k_param, k_in1, k_in2 = jax.random.split(key, 3)
    params = init_params(k_param)

    # Multi-tile path (R = 190 -> 2 parallel lane tiles).
    B, N, T, D = 2, 5, 19, 4
    inputs = jax.random.normal(k_in1, (B, N, T, D), jnp.float32)
    preds = jax.block_until_ready(rnn_decoder_forward(params, inputs))
    assert preds.shape == (B, N, PRED_STEPS, N_IN), preds.shape
    ref = jax.block_until_ready(_reference_jax(params, inputs))
    assert jnp.allclose(preds, ref, atol=1e-5, rtol=1e-5), float(
        jnp.max(jnp.abs(preds - ref)))

    # Single-tile path (R = 57 -> one 128-lane tile).
    inputs2 = jax.random.normal(k_in2, (1, 3, 19, 4), jnp.float32)
    preds2 = jax.block_until_ready(rnn_decoder_forward(params, inputs2))
    ref2 = jax.block_until_ready(_reference_jax(params, inputs2))
    assert jnp.allclose(preds2, ref2, atol=1e-5, rtol=1e-5), float(
        jnp.max(jnp.abs(preds2 - ref2)))

    print("KERNEL_OK")
</pallas_src>

<mosaic_0001>
module attributes {stable_mosaic.version = 11 : i64} {
  func.func @rnn_decoder_kernel(%arg0: i32, %arg1: memref<2x128xf32, #tpu.memory_space<vmem>>, %arg2: memref<336x32xf32, #tpu.memory_space<vmem>>, %arg3: memref<2x128xf32, #tpu.memory_space<vmem>>) attributes {dimension_semantics = [#tpu.dimension_semantics<parallel>], iteration_bounds = array<i64: 2>, scalar_prefetch = 0 : i64, scratch_operands = 0 : i64, tpu.core_type = #tpu.core_type<tc>, window_params = [{transform_indices = @transform_0, window_bounds = array<i64: 2, 128>}, {pipeline_mode = #tpu.pipeline_mode<synchronous>, transform_indices = @transform_1, window_bounds = array<i64: 336, 32>}, {transform_indices = @transform_2, window_bounds = array<i64: 2, 128>}]} {
    %c0 = arith.constant 0 : index
    %c0_0 = arith.constant 0 : index
    %0 = vector.load %arg1[%c0, %c0_0] : memref<2x128xf32, #tpu.memory_space<vmem>>, vector<2x128xf32>
    %c0_1 = arith.constant 0 : index
    %c0_2 = arith.constant 0 : index
    %1 = vector.load %arg2[%c0_1, %c0_2] : memref<336x32xf32, #tpu.memory_space<vmem>>, vector<96x2xf32>
    %cst = arith.constant dense<0.000000e+00> : vector<96x128xf32>
    %2 = tpu.matmul %1, %0, %cst {dimension_numbers = #tpu.dot_dimension_numbers<[1], [0], [0], [1], [0, 0, 1, 1], [], []>} : vector<96x2xf32>, vector<2x128xf32>, vector<96x128xf32> -> vector<96x128xf32>
    %c168 = arith.constant 168 : index
    %c0_3 = arith.constant 0 : index
    %3 = vector.load %arg2[%c168, %c0_3] : memref<336x32xf32, #tpu.memory_space<vmem>>, vector<96x1xf32>
    %4 = vector.broadcast %3 : vector<96x1xf32> to vector<96x128xf32>
    %5 = arith.addf %2, %4 : vector<96x128xf32>
    %6 = vector.extract_strided_slice %5 {offsets = [0, 0], sizes = [32, 128], strides = [1, 1]} : vector<96x128xf32> to vector<32x128xf32>
    %7 = math.tanh %6 : vector<32x128xf32>
    %8 = vector.extract_strided_slice %5 {offsets = [32, 0], sizes = [32, 128], strides = [1, 1]} : vector<96x128xf32> to vector<32x128xf32>
    %9 = arith.negf %8 : vector<32x128xf32>
    %10 = math.exp %9 : vector<32x128xf32>
    %cst_4 = arith.constant 1.000000e+00 : f32
    %11 = vector.broadcast %cst_4 : f32 to vector<32x128xf32>
    %12 = arith.addf %11, %10 : vector<32x128xf32>
    %13 = arith.divf %11, %12 : vector<32x128xf32>
    %14 = vector.extract_strided_slice %5 {offsets = [64, 0], sizes = [32, 128], strides = [1, 1]} : vector<96x128xf32> to vector<32x128xf32>
    %15 = math.tanh %14 : vector<32x128xf32>
    %cst_5 = arith.constant 1.000000e+00 : f32
    %16 = vector.broadcast %cst_5 : f32 to vector<32x128xf32>
    %17 = arith.subf %16, %13 : vector<32x128xf32>
    %18 = arith.mulf %17, %15 : vector<32x128xf32>
    %19 = arith.mulf %13, %7 : vector<32x128xf32>
    %20 = arith.addf %18, %19 : vector<32x128xf32>
    %c96 = arith.constant 96 : index
    %c0_6 = arith.constant 0 : index
    %21 = vector.load %arg2[%c96, %c0_6] : memref<336x32xf32, #tpu.memory_space<vmem>>, vector<32x32xf32>
    %cst_7 = arith.constant dense<0.000000e+00> : vector<32x128xf32>
    %22 = tpu.matmul %21, %20, %cst_7 {dimension_numbers = #tpu.dot_dimension_numbers<[1], [0], [0], [1], [0, 0, 1, 1], [], []>} : vector<32x32xf32>, vector<32x128xf32>, vector<32x128xf32> -> vector<32x128xf32>
    %c264 = arith.constant 264 : index
    %c0_8 = arith.constant 0 : index
    %23 = vector.load %arg2[%c264, %c0_8] : memref<336x32xf32, #tpu.memory_space<vmem>>, vector<32x1xf32>
    %24 = vector.broadcast %23 : vector<32x1xf32> to vector<32x128xf32>
    %25 = arith.addf %22, %24 : vector<32x128xf32>
    %cst_9 = arith.constant 0.000000e+00 : f32
    %26 = vector.broadcast %cst_9 : f32 to vector<32x128xf32>
    %27 = arith.maximumf %25, %26 : vector<32x128xf32>
    %c128 = arith.constant 128 : index
    %c0_10 = arith.constant 0 : index
    %28 = vector.load %arg2[%c128, %c0_10] : memref<336x32xf32, #tpu.memory_space<vmem>>, vector<32x32xf32>
    %cst_11 = arith.constant dense<0.000000e+00> : vector<32x128xf32>
    %29 = tpu.matmul %28, %27, %cst_11 {dimension_numbers = #tpu.dot_dimension_numbers<[1], [0], [0], [1], [0, 0, 1, 1], [], []>} : vector<32x32xf32>, vector<32x128xf32>, vector<32x128xf32> -> vector<32x128xf32>
    %c296 = arith.constant 296 : index
    %c0_12 = arith.constant 0 : index
    %30 = vector.load %arg2[%c296, %c0_12] : memref<336x32xf32, #tpu.memory_space<vmem>>, vector<32x1xf32>
    %31 = vector.broadcast %30 : vector<32x1xf32> to vector<32x128xf32>
    %32 = arith.addf %29, %31 : vector<32x128xf32>
    %cst_13 = arith.constant 0.000000e+00 : f32
    %33 = vector.broadcast %cst_13 : f32 to vector<32x128xf32>
    %34 = arith.maximumf %32, %33 : vector<32x128xf32>
    %c160 = arith.constant 160 : index
    %c0_14 = arith.constant 0 : index
    %35 = vector.load %arg2[%c160, %c0_14] : memref<336x32xf32, #tpu.memory_space<vmem>>, vector<2x32xf32>
    %cst_15 = arith.constant dense<0.000000e+00> : vector<2x128xf32>
    %36 = tpu.matmul %35, %34, %cst_15 {dimension_numbers = #tpu.dot_dimension_numbers<[1], [0], [0], [1], [0, 0, 1, 1], [], []>} : vector<2x32xf32>, vector<32x128xf32>, vector<2x128xf32> -> vector<2x128xf32>
    %c328 = arith.constant 328 : index
    %c0_16 = arith.constant 0 : index
    %37 = vector.load %arg2[%c328, %c0_16] : memref<336x32xf32, #tpu.memory_space<vmem>>, vector<2x1xf32>
    %38 = vector.broadcast %37 : vector<2x1xf32> to vector<2x128xf32>
    %39 = arith.addf %36, %38 : vector<2x128xf32>
    %40 = arith.addf %0, %39 : vector<2x128xf32>
    %c0_17 = arith.constant 0 : index
    %c0_18 = arith.constant 0 : index
    %41 = vector.load %arg3[%c0_17, %c0_18] : memref<2x128xf32, #tpu.memory_space<vmem>>, vector<2x128xf32>
    tpu.vector_store %arg3[%c0_17, %c0_18], %40 {strides = array<i32>} : memref<2x128xf32, #tpu.memory_space<vmem>>, vector<2x128xf32>,
    return
  }
  func.func @transform_0(%arg0: i32) -> (i32, i32) {
    %c0_i32 = arith.constant 0 : i32
    %c0_i32_0 = arith.constant 0 : i32
    return %c0_i32, %arg0 : i32, i32
  }
  func.func @transform_1(%arg0: i32) -> (i32, i32) {
    %c0_i32 = arith.constant 0 : i32
    %c0_i32_0 = arith.constant 0 : i32
    %c0_i32_1 = arith.constant 0 : i32
    return %c0_i32, %c0_i32_0 : i32, i32
  }
  func.func @transform_2(%arg0: i32) -> (i32, i32) {
    %c0_i32 = arith.constant 0 : i32
    %c0_i32_0 = arith.constant 0 : i32
    return %c0_i32, %arg0 : i32, i32
  }
}

</mosaic_0001>

<bundles_post_ra>
// kernel: rnn_decoder_forward.1
= control target key start
LH: loop header
LB: loop body
LE: loop exit
PB: predicated region body
PF: predicated region fallthrough
CT: control target
= control target key end

     0   :  { %s1055_s9 = smov 0   ;;  %s1231_s0 = inlined_call_operand.vmem [shape: f32[2,256], index: 0, kind: input, shape index: {}]   ;;  %s1232_s1 = inlined_call_operand.vmem [shape: f32[336,32], index: 1, kind: input, shape index: {}]   ;;  %s1233_s2 = inlined_call_operand.vmem [shape: f32[2,256], index: 2, kind: output, shape index: {}]  }
   0x1 LB: > { %s832_s10 = sadd.s32 4294967295, %s1034_s9   ;;  %p836_p0 = scmp.ge.s32.totalorder %s1034_s9, 1  ;;  %s1034_s9 = sphi %s1055_s9, %s12_s9  }
   0x2   : > { %p111_p1 = scmp.lt.s32.totalorder %s1034_s9, 3 }
   0x4   : > { %p112_p2 = pnand %p836_p0, %p111_p1 }
   0x5   : > { %p131_p3 = scmp.lt.s32.totalorder (!%p112_p2), %s832_s10, 1  ;;  %v140_v0 = vld [vmem:[%s1232_s1] sm:$0xff] (!%p112_p2)  ;;  %vm224_vm0 = vcmask (!%p112_p2), 15360   ;;  %v1036_v1 = vmov (!%p112_p2), 0   ;;  %vm261_vm1 = vcmask (!%p112_p2), 1041408   ;;  %v156_v2 = vld [vmem:[%s1232_s1 + $0xc8] sm:$0xff] (!%p112_p2) }
   0x6   : > { %115 = sbr.rel (%p112_p2) target bundleno = 954 (0x3ba), region = 28  ;;  %903 = vmatprep.mubr.msk.f32.mxu0 (!%p112_p2), %vm224_vm0, %v140_v0  ;;  %994 = vset.pattern.permute.xlu0 (!%p112_p2), %v1036_v1  ;;  %v158_v3 = vld [vmem:[%s1232_s1 + $0xd8] sm:$0xff] (!%p112_p2)  ;;  %v141_v5 = vld [vmem:[%s1232_s1 + $0x8] sm:$0xff] (!%p112_p2)  ;;  %v157_v6 = vld [vmem:[%s1232_s1 + $0xd0] sm:$0xff] (!%p112_p2)  ;;  %vm466_vm2 = vcmask (!%p112_p2), 261120   ;;  %vm1038_vm3 = vmmov (!%p112_p2), 0  }
   0x7   : > { %995 = vset.pattern.permute.xlu1 (!%p112_p2), %v1036_v1  ;;  %186 = vperm.xlu0 (!%p112_p2), %994, %v156_v2   ;;  %v142_v7 = vld [vmem:[%s1232_s1 + $0x10] sm:$0xff] (!%p112_p2)  ;;  %v159_v8 = vld [vmem:[%s1232_s1 + $0xe0] sm:$0xff] (!%p112_p2)  ;;  %v143_v9 = vld [vmem:[%s1232_s1 + $0x18] sm:$0xff] (!%p112_p2) }
   0x8   : > { %196 = vperm.xlu1 (!%p112_p2), %995, %v158_v3   ;;  %v152_v10 = vld [vmem:[%s1232_s1 + $0xa8] sm:$0xff] (!%p112_p2)  ;;  %v144_v11 = vld [vmem:[%s1232_s1 + $0x20] sm:$0xff] (!%p112_p2)  ;;  %v153_v12 = vld [vmem:[%s1232_s1 + $0xb0] sm:$0xff] (!%p112_p2) }
   0x9   : > { %v145_v13 = vld [vmem:[%s1232_s1 + $0x28] sm:$0xff] (!%p112_p2)  ;;  %v146_v15 = vld [vmem:[%s1232_s1 + $0x30] sm:$0xff] (!%p112_p2)  ;;  %v147_v17 = vld [vmem:[%s1232_s1 + $0x38] sm:$0xff] (!%p112_p2) }
   0xa   : > { %v160_v14 = vld [vmem:[%s1232_s1 + $0xe8] sm:$0xff] (!%p112_p2)  ;;  %v161_v16 = vld [vmem:[%s1232_s1 + $0xf0] sm:$0xff] (!%p112_p2)  ;;  %v154_v18 = vld [vmem:[%s1232_s1 + $0xb8] sm:$0xff] (!%p112_p2) }
   0xb   : > { %191 = vperm.xlu0 (!%p112_p2), %994, %v157_v6   ;;  %v148_v19 = vld [vmem:[%s1232_s1 + $0x40] sm:$0xff] (!%p112_p2)  ;;  %v149_v21 = vld [vmem:[%s1232_s1 + $0x48] sm:$0xff] (!%p112_p2)  ;;  %v162_v22 = vld [vmem:[%s1232_s1 + $0xf8] sm:$0xff] (!%p112_p2) }
   0xc   : > { %201 = vperm.xlu1 (!%p112_p2), %995, %v159_v8   ;;  %v155_v20 = vld [vmem:[%s1232_s1 + $0xc0] sm:$0xff] (!%p112_p2)  ;;  %v150_v23 = vld [vmem:[%s1232_s1 + $0x50] sm:$0xff] (!%p112_p2)  ;;  %v151_v25 = vld [vmem:[%s1232_s1 + $0x58] sm:$0xff] (!%p112_p2) }
   0xd   : > { %s1235_s10 = smov (!%p131_p3, %s832_s10), 1  ;;  %v163_v24 = vld [vmem:[%s1232_s1 + $0x100] sm:$0xff]  ;;  %v442_v26 = vld [vmem:[%s1232_s1 + $0x108] sm:$0xff]  ;;  %v443_v27 = vld [vmem:[%s1232_s1 + $0x110] sm:$0xff] }
   0xe   : > { %s837_s13 = sshll.u32 %s1235_s10, 1  ;;  %v444_v28 = vld [vmem:[%s1232_s1 + $0x118] sm:$0xff]  ;;  %v445_v29 = vld [vmem:[%s1232_s1 + $0x120] sm:$0xff]  ;;  %v572_v30 = vld [vmem:[%s1232_s1 + $0x128] sm:$0xff] }
   0xf   : > { %s134_s20 = scalar_lea.vmem %s1231_s0, %s837_s13  ;;  %166 = vperm.xlu0 %994, %v152_v10   ;;  %v573_v31 = vld [vmem:[%s1232_s1 + $0x130] sm:$0xff]  ;;  %v574_v32 = vld [vmem:[%s1232_s1 + $0x138] sm:$0xff]  ;;  %v575_v33 = vld [vmem:[%s1232_s1 + $0x140] sm:$0xff]  ;;  %s138_s26 = scalar_lea.vmem %s1233_s2, %s837_s13 }
  0x10   : > { %v1081_v4 = vld [vmem:[%s134_s20] sm:$0x3]  ;;  %171 = vperm.xlu1 %995, %v153_v12   ;;  %v698_v34 = vld [vmem:[%s1232_s1 + $0x148] sm:$0x3] }
  0x11   : > { %901 = vmatprep.subr.msk.mxu0 %vm261_vm1, %v1081_v4  ;;  %v438_v35 = vld [vmem:[%s1232_s1 + $0x60] sm:$0xff] }
  0x12   : > { %902 = vmatpush3.msk.msra.mxu0 %vm261_vm1, %v1081_v4  ;;  %929 = vmatprep.mubr.msk.f32.mxu1 %vm466_vm2, %v438_v35 }
  0x13   : > { %904 = vmatmul.mubr.msk.f32.vlgmr.msra.gmra.mrb[0].mxu0 %vm224_vm0, %v141_v5  ;;  %206 = vperm.xlu0 %994, %v160_v14  }
  0x14   : > { %906 = vmatprep.mubr.msk.f32.mxu0 %vm224_vm0, %v142_v7  ;;  %211 = vperm.xlu1 %995, %v161_v16  }
  0x17   : > { %907 = vmatmul.mubr.msk.f32.gmra.mrb[2].mxu0 %vm224_vm0, %v143_v9  ;;  %176 = vperm.xlu0 %994, %v154_v18  }
  0x18   : > { %909 = vmatprep.mubr.msk.f32.mxu0 %vm224_vm0, %v144_v11  ;;  %181 = vperm.xlu1 %995, %v155_v20  }
  0x1b   : > { %910 = vmatmul.mubr.msk.f32.gmra.mrb[4].mxu0 %vm224_vm0, %v145_v13  ;;  %216 = vperm.xlu0 %994, %v162_v22  }
  0x1c   : > { %912 = vmatprep.mubr.msk.f32.mxu0 %vm224_vm0, %v146_v15  ;;  %221 = vperm.xlu1 %995, %v163_v24  }
  0x1f   : > { %913 = vmatmul.mubr.msk.f32.gmra.mrb[6].mxu0 %vm224_vm0, %v147_v17  ;;  %448 = vperm.xlu0 %994, %v442_v26  }
  0x20   : > { %915 = vmatprep.mubr.msk.f32.mxu0 %vm224_vm0, %v148_v19  ;;  %453 = vperm.xlu1 %995, %v443_v27  }
  0x23   : > { %916 = vmatmul.mubr.msk.f32.gmra.mrb[8].mxu0 %vm224_vm0, %v149_v21  ;;  %458 = vperm.xlu0 %994, %v444_v28  }
  0x24   : > { %918 = vmatprep.mubr.msk.f32.mxu0 %vm224_vm0, %v150_v23  ;;  %463 = vperm.xlu1 %995, %v445_v29  }
  0x27   : > { %919 = vmatmul.mubr.msk.f32.gmra.mrb[10].mxu0 %vm224_vm0, %v151_v25  ;;  %578 = vperm.xlu0 %994, %v572_v30  }
  0x28   : > { %583 = vperm.xlu1 %995, %v573_v31  }
  0x2b   : > { %588 = vperm.xlu0 %994, %v574_v32  }
  0x2c   : > { %593 = vperm.xlu1 %995, %v575_v33  }
  0x2f   : > { %701 = vperm.xlu0 %994, %v698_v34  }
  0x86   : > { %v187_v37 = vpop.permute.xlu0 %186 }
  0x87   : > { %v197_v36 = vpop.permute.xlu1 %196 }
  0x8a   : > { %v192_v41 = vpop.permute.xlu0 %191 }
  0x8b   : > { %v202_v39 = vpop.permute.xlu1 %201 }
  0x8e   : > { %v167_v45 = vpop.permute.xlu0 %166 }
  0x8f   : > { %v172_v44 = vpop.permute.xlu1 %171 }
  0x92   : > { %v207_v56 = vpop.permute.xlu0 %206 }
  0x93   : > { %v212_v53 = vpop.permute.xlu1 %211 }
  0x96   : > { %v177_v1 = vpop.permute.xlu0 %176 }
  0x97   : > { %v182_v63 = vpop.permute.xlu1 %181 }
  0x9a   : > { %v217_v16 = vpop.permute.xlu0 %216 }
  0x9b   : > { %v222_v14 = vpop.permute.xlu1 %221 }
  0xe6   : > { %v905_v38 = vpop.f32.mrb[0].mxu0 }
  0xe7   : > { %v331_v40 = vpop.f32.mrb[1].mxu0  ;;  %v337_v62 = vadd.f32 %v905_v38, %v172_v44 }
  0xe8   : > { %v332_v0 = vadd.f32 %v331_v40, %v167_v45 }
  0xea   : > { %v908_v42 = vpop.f32.mrb[2].mxu0 }
  0xeb   : > { %v341_v43 = vpop.f32.mrb[3].mxu0  ;;  %v347_v2 = vadd.f32 %v908_v42, %v182_v63 }
  0xec   : > { %v342_v5 = vadd.f32 %v341_v43, %v177_v1 }
  0xee   : > { %v911_v46 = vpop.f32.mrb[4].mxu0 }
  0xef   : > { %v357_v47 = vadd.f32 %v911_v46, %v192_v41  ;;  %v351_v48 = vpop.f32.mrb[5].mxu0 }
  0xf0   : > { %v352_v49 = vadd.f32 %v351_v48, %v187_v37 }
  0xf1   : > { %v853_v50 = vmul.f32 -1.442695, %v357_v47 }
  0xf2   : > { %v852_v51 = vmul.f32 -1.442695, %v352_v49  ;;  %v914_v52 = vpop.f32.mrb[6].mxu0 }
  0xf3   : > { %996 = vpow2.f32 %v853_v50  ;;  %v367_v54 = vadd.f32 %v914_v52, %v202_v39  ;;  %v361_v55 = vpop.f32.mrb[7].mxu0  ;;  %v440_v52 = vld [vmem:[%s1232_s1 + $0x70] sm:$0xff] }
  0xf4   : > { %998 = vpow2.f32 %v852_v51  ;;  %v362_v57 = vadd.f32 %v361_v55, %v197_v36  ;;  %v439_v51 = vld [vmem:[%s1232_s1 + $0x68] sm:$0xff]  ;;  %v454_v55 = vpop.permute.xlu1 %453 }
  0xf5   : > { %v855_v58 = vmul.f32 -1.442695, %v367_v54  ;;  %v568_v54 = vld [vmem:[%s1232_s1 + $0x80] sm:$0xff] }
  0xf6   : > { %v854_v59 = vmul.f32 -1.442695, %v362_v57  ;;  %v917_v60 = vpop.f32.mrb[8].mxu0 }
  0xf7   : > { %1000 = vpow2.f32 %v855_v58  ;;  %v371_v61 = vpop.f32.mrb[9].mxu0  ;;  %v377_v10 = vadd.f32 %v917_v60, %v212_v53  ;;  %v441_v53 = vld [vmem:[%s1232_s1 + $0x78] sm:$0xff] }
  0xf8   : > { %1002 = vpow2.f32 %v854_v59  ;;  %v372_v12 = vadd.f32 %v371_v61, %v207_v56  ;;  %v449_v56 = vpop.permute.xlu0 %448 }
  0xf9   : > { %1004 = vtanh.f32 %v337_v62  ;;  %v464_v62 = vpop.permute.xlu1 %463 }
  0xfa   : > { %v920_v3 = vpop.f32.mrb[10].mxu0  ;;  %1006 = vtanh.f32 %v332_v0 }
  0xfb   : > { %v381_v6 = vpop.f32.mrb[11].mxu0  ;;  %1008 = vtanh.f32 %v347_v2  ;;  %v387_v18 = vadd.f32 %v920_v3, %v222_v14  ;;  %v1039_v14 = vmov 0.0  }
  0xfc   : > { %1010 = vtanh.f32 %v342_v5  ;;  %v382_v20 = vadd.f32 %v381_v6, %v217_v16  ;;  %v459_v1 = vpop.permute.xlu0 %458 }
  0xfd   : > { %v997_v7 = vpop.eup %996 }
  0xfe   : > { %v999_v8 = vpop.eup %998  ;;  %v407_v9 = vadd.f32 1.0, %v997_v7 }
  0xff   : > { %v406_v11 = vadd.f32 1.0, %v999_v8 }
 0x100   : > { %1012 = vrcp.f32 %v407_v9  ;;  %v579_v16 = vpop.permute.xlu0 %578 }
 0x101   : > { %v1001_v13 = vpop.eup %1000  ;;  %1014 = vrcp.f32 %v406_v11  ;;  %v570_v11 = vld [vmem:[%s1232_s1 + $0x90] sm:$0xff] }
 0x102   : > { %v1003_v15 = vpop.eup %1002  ;;  %v409_v17 = vadd.f32 1.0, %v1001_v13  ;;  %1016 = vtanh.f32 %v377_v10  ;;  %v569_v10 = vld [vmem:[%s1232_s1 + $0x88] sm:$0xff]  ;;  %v1037_v13 = vmov 0.0|0.0  }
 0x103   : > { %v408_v19 = vadd.f32 1.0, %v1003_v15  ;;  %1018 = vtanh.f32 %v372_v12  ;;  %v1005_v21 = vpop.eup %1004  ;;  %v571_v12 = vld [vmem:[%s1232_s1 + $0x98] sm:$0xff]  ;;  %v584_v15 = vpop.permute.xlu1 %583 }
 0x104   : > { %1020 = vrcp.f32 %v409_v17  ;;  %v1007_v22 = vpop.eup %1006 }
 0x105   : > { %1022 = vrcp.f32 %v408_v19  ;;  %v1009_v23 = vpop.eup %1008 }
 0x106   : > { %1024 = vtanh.f32 %v387_v18  ;;  %v1011_v24 = vpop.eup %1010 }
 0x107   : > { %1026 = vtanh.f32 %v382_v20 }
 0x10a   : > { %v1013_v25 = vpop.eup %1012 }
 0x10b   : > { %v1015_v26 = vpop.eup %1014  ;;  %v423_v27 = vsub.f32 1.0, %v1013_v25  ;;  %v431_v28 = vmul.f32 %v1013_v25, %v1005_v21  ;;  %v589_v25 = vpop.permute.xlu0 %588 }
 0x10c   : > { %v1017_v29 = vpop.eup %1016  ;;  %v422_v30 = vsub.f32 1.0, %v1015_v26  ;;  %v430_v31 = vmul.f32 %v1015_v26, %v1007_v22  ;;  %v594_v22 = vpop.permute.xlu1 %593 }
 0x10d   : > { %v1019_v32 = vpop.eup %1018  ;;  %v427_v33 = vmul.f32 %v1017_v29, %v423_v27 }
 0x10e   : > { %v1021_v34 = vpop.eup %1020  ;;  %v426_v35 = vmul.f32 %v1019_v32, %v422_v30 }
 0x10f   : > { %v1023_v36 = vpop.eup %1022  ;;  %v435_v37 = vadd.f32 %v431_v28, %v427_v33  ;;  %v425_v38 = vsub.f32 1.0, %v1021_v34  ;;  %v433_v39 = vmul.f32 %v1021_v34, %v1009_v23  ;;  %v697_v33 = vld [vmem:[%s1232_s1 + $0xa0] sm:$0x3]  ;;  %v702_v34 = vpop.permute.xlu0 %701 }
 0x110   : > { %v1025_v40 = vpop.eup %1024  ;;  %v434_v41 = vadd.f32 %v430_v31, %v426_v35  ;;  %v424_v42 = vsub.f32 1.0, %v1023_v36  ;;  %v432_v43 = vmul.f32 %v1023_v36, %v1011_v24 }
 0x111   : > { %v1027_v44 = vpop.eup %1026  ;;  %v429_v45 = vmul.f32 %v1025_v40, %v425_v38 }
 0x112   : > { %v960_v46 = vpack.c.bf16 %v435_v37, %v434_v41  ;;  %v428_v47 = vmul.f32 %v1027_v44, %v424_v42 }
 0x113   : > { %v437_v48 = vadd.f32 %v433_v39, %v429_v45 }
 0x114   : > { %961 = vmatprep.subr.bf16.mxu1 %v960_v46  ;;  %v436_v49 = vadd.f32 %v432_v43, %v428_v47 }
 0x115   : > { %963 = vmatpush3.bf16.msra.mxu1 %v960_v46 }
 0x116   : > { %v964_v50 = vpack.c.bf16 %v437_v48, %v436_v49 }
 0x118   : > { %965 = vmatprep.subr.bf16.mxu1 %v964_v50 }
 0x119   : > { %967 = vmatpush3.bf16.msra.mxu1 %v964_v50 }
 0x11c   : > { %930 = vmatmul.mubr.msk.f32.vlgmr.msra.gmra.mrb[0].mxu1 %vm466_vm2, %v439_v51 }
 0x11d   : > { %932 = vmatprep.mubr.msk.f32.mxu1 %vm466_vm2, %v440_v52 }
 0x120   : > { %933 = vmatmul.mubr.msk.f32.gmra.mrb[2].mxu1 %vm466_vm2, %v441_v53 }
 0x121   : > { %943 = vmatprep.mubr.msk.f32.mxu1 %vm466_vm2, %v568_v54 }
 0x1ef   : > { %v931_v57 = vpop.f32.mrb[0].mxu1 }
 0x1f0   : > { %v551_v58 = vadd.f32 %v931_v57, %v454_v55  ;;  %v545_v59 = vpop.f32.mrb[1].mxu1 }
 0x1f1   : > { %v546_v60 = vadd.f32 %v545_v59, %v449_v56 }
 0x1f2   : > { %v565_v61 = vmax.f32 %v551_v58, 0.0 }
 0x1f3   : > { %v564_v63 = vmax.f32 %v546_v60, 0.0  ;;  %v934_v0 = vpop.f32.mrb[2].mxu1 }
 0x1f4   : > { %v561_v2 = vadd.f32 %v934_v0, %v464_v62  ;;  %v555_v3 = vpop.f32.mrb[3].mxu1 }
 0x1f5   : > { %v968_v5 = vpack.c.bf16 %v565_v61, %v564_v63  ;;  %v556_v6 = vadd.f32 %v555_v3, %v459_v1 }
 0x1f6   : > { %v567_v7 = vmax.f32 %v561_v2, 0.0 }
 0x1f7   : > { %v566_v8 = vmax.f32 %v556_v6, 0.0  ;;  %969 = vmatprep.subr.bf16.mxu1 %v968_v5 }
 0x1f8   : > { %971 = vmatpush3.bf16.msra.mxu1 %v968_v5 }
 0x1f9   : > { %v972_v9 = vpack.c.bf16 %v567_v7, %v566_v8 }
 0x1fb   : > { %973 = vmatprep.subr.bf16.mxu1 %v972_v9 }
 0x1fc   : > { %975 = vmatpush3.bf16.msra.mxu1 %v972_v9 }
 0x1fd   : > { %976 = vmatprep.subr.bf16.mxu1 %v1037_v13 }
 0x1ff   : > { %944 = vmatmul.mubr.msk.f32.vlgmr.msra.gmra.mrb[4].mxu1 %vm466_vm2, %v569_v10 }
 0x200   : > { %946 = vmatprep.mubr.msk.f32.mxu1 %vm466_vm2, %v570_v11 }
 0x203   : > { %947 = vmatmul.mubr.msk.f32.gmra.mrb[6].mxu1 %vm466_vm2, %v571_v12 }
 0x204   : > { %957 = vmatprep.mubr.msk.f32.mxu1 %vm1038_vm3, %v1039_v14 }
 0x2d2   : > { %v945_v17 = vpop.f32.mrb[4].mxu1 }
 0x2d3   : > { %v680_v18 = vadd.f32 %v945_v17, %v584_v15  ;;  %v674_v19 = vpop.f32.mrb[5].mxu1 }
 0x2d4   : > { %v675_v20 = vadd.f32 %v674_v19, %v579_v16 }
 0x2d5   : > { %v694_v21 = vmax.f32 %v680_v18, 0.0 }
 0x2d6   : > { %v693_v23 = vmax.f32 %v675_v20, 0.0  ;;  %v948_v24 = vpop.f32.mrb[6].mxu1 }
 0x2d7   : > { %v690_v26 = vadd.f32 %v948_v24, %v594_v22  ;;  %v684_v27 = vpop.f32.mrb[7].mxu1 }
 0x2d8   : > { %v977_v28 = vpack.c.bf16 %v694_v21, %v693_v23  ;;  %v685_v29 = vadd.f32 %v684_v27, %v589_v25 }
 0x2d9   : > { %v696_v30 = vmax.f32 %v690_v26, 0.0 }
 0x2da   : > { %v695_v31 = vmax.f32 %v685_v29, 0.0  ;;  %978 = vmatpush3.bf16.msra.mxu1 %v977_v28 }
 0x2db   : > { %979 = vmatprep.subr.bf16.mxu1 %v1037_v13 }
 0x2dc   : > { %v980_v32 = vpack.c.bf16 %v696_v30, %v695_v31 }
 0x2de   : > { %981 = vmatpush3.bf16.msra.mxu1 %v980_v32 }
 0x2e1   : > { %958 = vmatmul.mubr.msk.f32.vlgmr.msra.gmra.mrb[8].mxu1 %vm466_vm2, %v697_v33 }
 0x3b4   : > { %v773_v35 = vpop.f32.mrb[8].mxu1 }
 0x3b5   : > { %v774_v36 = vadd.f32 %v773_v35, %v702_v34  ;;  %v959_v37 = vpop.f32.mrb[9].mxu1 }
 0x3b7   : > { %v777_v38 = vadd.f32 %v774_v36, %v1081_v4 }
 0x3b9   : > { %778 = vst [vmem:[%s138_s26] sm:$0x3] %v777_v38 }
 0x3ba PF: > { %s12_s9 = sadd.s32 1, %s1034_s9  }
 0x3bb   : > { %p9_p4 = scmp.ge.s32.totalorder %s12_s9, 4  }
 0x3bd   :  { %11 = sbr.rel (!%p9_p4) target bundleno = 1 (0x1), region = 58 }

</bundles_post_ra>
